<compile_context>
chip_gen: v7x
topology: tpu7x:2x2x1
jax: 0.10.0
libtpu: 0.0.40
codegen_flags: <defaults>
</compile_context>

<pallas_src>
import numpy as np
import jax
import jax.numpy as jnp
from jax.experimental import pallas as pl
from jax.experimental.pallas import tpu as pltpu


def _adaptive_pool_matrix(in_size: int, out_size: int) -> np.ndarray:
    """A[i, p] = 1/len(bin_i) if p in bin_i else 0 (PyTorch adaptive bins)."""
    A = np.zeros((out_size, in_size), dtype=np.float32)
    for i in range(out_size):
        start = (i * in_size) // out_size
        end = -((-(i + 1) * in_size) // out_size)  # ceil((i+1)*in/out)
        A[i, start:end] = 1.0 / (end - start)
    return A


def _adaptive_pool_kernel(x_ref, m_ref, o_ref):
    # x_ref: (TC, H*W)            block of channels, spatial flattened on lanes
    # m_ref: (H*W, out_h*out_w)   f32 kron(A, B)^T pooling weights (constant)
    # o_ref: (TC, out_h*out_w)
    x = x_ref[...].astype(jnp.float32)  # exact weights for bf16 inputs too
    o_ref[...] = jnp.dot(
        x, m_ref[...], preferred_element_type=jnp.float32
    ).astype(o_ref.dtype)


def _chip_info():
    """(num_tensorcores, safe vmem_limit_bytes) for the attached TPU."""
    try:
        kind = jax.devices()[0].device_kind.lower()
    except Exception:
        kind = ""
    if ("v5" in kind) or ("v6" in kind):
        return 1, 64 * 1024 * 1024      # 1 TC, 128 MiB physical VMEM
    # v7x (2 TCs, 64 MiB VMEM) or unknown chip: conservative VMEM, assume 2 TCs.
    return 2, 40 * 1024 * 1024


def adaptive_pool(x: jax.Array, output_size) -> jax.Array:
    """Equivalent of AdaptivePool(output_size).forward(x) for NCHW x."""
    n, c, h, w = x.shape
    out_h = h // output_size[0]
    out_w = w // output_size[1]
    if out_h < 1 or out_w < 1:
        raise ValueError(
            f"output_size {tuple(output_size)} exceeds input spatial dims "
            f"({h}, {w}); pooled output would be empty.")

    hw, ohw, nc = h * w, out_h * out_w, n * c

    # Tiny static averaging matrices (PyTorch adaptive bins), fused via kron:
    # M[i*out_w + q, p*w + w'] = A[i, p] * B[q, w']  =>  O2d = X2d @ M^T
    A = _adaptive_pool_matrix(h, out_h)                     # (out_h, h)
    B = _adaptive_pool_matrix(w, out_w)                     # (out_w, w)
    # Keep pooling weights in float32: exact 1/count weights even when x is
    # bf16; the kernel is HBM-bound so the f32 matmul path is effectively free.
    m_t = jnp.asarray(np.kron(A, B).T, dtype=jnp.float32)   # (hw, ohw)
    # TODO(synk): for very large pooled outputs (out_h*out_w >~ 256) switch to
    # the factored two-stage form (pool W with B^T, then H with A) with a VMEM
    # accumulator; the kron matmul inflates MXU work / M traffic by ~out_h*out_w.

    # Lane-dense 2D views: rows = fused N*C, cols = flattened spatial.
    x2 = x.reshape(nc, hw)
    itemsize = x2.dtype.itemsize
    num_tc, vmem_limit = _chip_info()

    # Channel-block (row) count: ~8 MiB per input block (amortizes the
    # ~0.35 us/step cost, DMAs near HBM roofline). On multi-TC chips also cap
    # so the grid has >= 2*num_tc steps for megacore sharding.
    sublane = max(8, 32 // itemsize)           # 8 f32, 16 bf16, 32 int8/fp8
    bytes_per_row = hw * itemsize
    tc = max(sublane, (8 * 1024 * 1024) // max(1, bytes_per_row))
    if num_tc > 1:
        tc = min(tc, max(sublane, pl.cdiv(nc, 2 * num_tc)))
    tc = min(tc, nc)

    # Fit guard: 2x input buffers + 1x f32 M + 2x output buffers within ~70% of
    # the VMEM limit (matters for very large feature maps / v7x's 64 MiB VMEM).
    def _vmem_use(rows):
        return 2 * rows * hw * itemsize + hw * ohw * 4 + 2 * rows * ohw * itemsize
    while tc > sublane and _vmem_use(tc) > int(0.7 * vmem_limit):
        tc = max(sublane, tc // 2)

    if tc < nc:
        tc = max(sublane, (tc // sublane) * sublane)
    grid = (pl.cdiv(nc, tc),)

    cost = pl.CostEstimate(
        flops=2 * nc * hw * ohw,
        transcendentals=0,
        bytes_accessed=nc * hw * itemsize + hw * ohw * 4 + nc * ohw * itemsize,
    )

    def _build(single_buffer_m: bool):
        if single_buffer_m:
            # Constant index map -> never re-fetched; don't waste a 2nd buffer.
            m_spec = pl.BlockSpec((hw, ohw), lambda i: (0, 0),
                                  pipeline_mode=pl.Buffered(buffer_count=1))
        else:
            m_spec = pl.BlockSpec((hw, ohw), lambda i: (0, 0))
        return pl.pallas_call(
            _adaptive_pool_kernel,
            out_shape=jax.ShapeDtypeStruct((nc, ohw), x.dtype),
            grid=grid,
            in_specs=[
                pl.BlockSpec((tc, hw), lambda i: (i, 0)),   # channel block
                m_spec,                                     # shared pooling matrix
            ],
            out_specs=pl.BlockSpec((tc, ohw), lambda i: (i, 0)),
            compiler_params=pltpu.CompilerParams(
                dimension_semantics=("parallel",),
                vmem_limit_bytes=vmem_limit,
            ),
            cost_estimate=cost,
        )

    try:
        out2 = _build(True)(x2, m_t)
    except Exception:
        # pipeline_mode=Buffered(1) unsupported on this jax version: fall back
        # to the default double-buffered constant (same math, a bit more VMEM).
        out2 = _build(False)(x2, m_t)

    return out2.reshape(n, c, out_h, out_w)


def _reference(x, output_size):
    """Pure-JAX f32 reference (general adaptive bins) for a sanity check."""
    n, c, h, w = x.shape
    out_h = h // output_size[0]
    out_w = w // output_size[1]
    A = jnp.asarray(_adaptive_pool_matrix(h, out_h))
    B = jnp.asarray(_adaptive_pool_matrix(w, out_w))
    return jnp.einsum("ph,nchw,qw->ncpq", A, x.astype(jnp.float32), B)


if __name__ == "__main__":
    key = jax.random.PRNGKey(0)
    x = jax.random.normal(key, (2, 4, 16, 16), dtype=jnp.float32)
    output_size = (2, 2)  # -> pooled output spatial size (16//2, 16//2) = (8, 8)

    # f32 path
    out = jax.block_until_ready(adaptive_pool(x, output_size))
    ref = _reference(x, output_size)
    assert out.shape == (2, 4, 8, 8), out.shape
    np.testing.assert_allclose(np.asarray(out), np.asarray(ref),
                               rtol=1e-5, atol=1e-5)

    # bf16 path (pooling weights stay f32; only the final output cast rounds)
    xb = x.astype(jnp.bfloat16)
    outb = jax.block_until_ready(adaptive_pool(xb, output_size))
    refb = _reference(xb, output_size)
    np.testing.assert_allclose(np.asarray(outb.astype(jnp.float32)),
                               np.asarray(refb), rtol=2e-2, atol=2e-2)

    print("KERNEL_OK")
</pallas_src>

<mosaic_0001>
module attributes {stable_mosaic.version = 11 : i64} {
  func.func @_adaptive_pool_kernel(%arg0: i32, %arg1: memref<8x256xf32, #tpu.memory_space<vmem>>, %arg2: memref<256x64xf32, #tpu.memory_space<vmem>>, %arg3: memref<8x64xf32, #tpu.memory_space<vmem>>) attributes {dimension_semantics = [#tpu.dimension_semantics<parallel>], iteration_bounds = array<i64: 1>, scalar_prefetch = 0 : i64, scratch_operands = 0 : i64, tpu.core_type = #tpu.core_type<tc>, window_params = [{transform_indices = @transform_0, window_bounds = array<i64: 8, 256>}, {pipeline_mode = #tpu.pipeline_mode<synchronous>, transform_indices = @transform_1, window_bounds = array<i64: 256, 64>}, {transform_indices = @transform_2, window_bounds = array<i64: 8, 64>}]} {
    %c0 = arith.constant 0 : index
    %c0_0 = arith.constant 0 : index
    %0 = vector.load %arg1[%c0, %c0_0] : memref<8x256xf32, #tpu.memory_space<vmem>>, vector<8x256xf32>
    %c0_1 = arith.constant 0 : index
    %c0_2 = arith.constant 0 : index
    %1 = vector.load %arg2[%c0_1, %c0_2] : memref<256x64xf32, #tpu.memory_space<vmem>>, vector<256x64xf32>
    %cst = arith.constant dense<0.000000e+00> : vector<8x64xf32>
    %2 = tpu.matmul %0, %1, %cst {dimension_numbers = #tpu.dot_dimension_numbers<[1], [0], [0], [1], [0, 0, 1, 1], [], []>} : vector<8x256xf32>, vector<256x64xf32>, vector<8x64xf32> -> vector<8x64xf32>
    %c0_3 = arith.constant 0 : index
    %c0_4 = arith.constant 0 : index
    %3 = vector.load %arg3[%c0_3, %c0_4] : memref<8x64xf32, #tpu.memory_space<vmem>>, vector<8x64xf32>
    tpu.vector_store %arg3[%c0_3, %c0_4], %2 {strides = array<i32>} : memref<8x64xf32, #tpu.memory_space<vmem>>, vector<8x64xf32>,
    return
  }
  func.func @transform_0(%arg0: i32) -> (i32, i32) {
    %c0_i32 = arith.constant 0 : i32
    %c0_i32_0 = arith.constant 0 : i32
    return %arg0, %c0_i32 : i32, i32
  }
  func.func @transform_1(%arg0: i32) -> (i32, i32) {
    %c0_i32 = arith.constant 0 : i32
    %c0_i32_0 = arith.constant 0 : i32
    %c0_i32_1 = arith.constant 0 : i32
    return %c0_i32, %c0_i32_0 : i32, i32
  }
  func.func @transform_2(%arg0: i32) -> (i32, i32) {
    %c0_i32 = arith.constant 0 : i32
    %c0_i32_0 = arith.constant 0 : i32
    return %arg0, %c0_i32 : i32, i32
  }
}

module attributes {stable_mosaic.version = 11 : i64} {
  func.func @_adaptive_pool_kernel(%arg0: i32, %arg1: memref<8x256xf32, #tpu.memory_space<vmem>>, %arg2: memref<256x64xf32, #tpu.memory_space<vmem>>, %arg3: memref<8x64xf32, #tpu.memory_space<vmem>>) attributes {dimension_semantics = [#tpu.dimension_semantics<parallel>], iteration_bounds = array<i64: 1>, scalar_prefetch = 0 : i64, scratch_operands = 0 : i64, tpu.core_type = #tpu.core_type<tc>, window_params = [{transform_indices = @transform_0, window_bounds = array<i64: 8, 256>}, {pipeline_mode = #tpu.pipeline_mode<synchronous>, transform_indices = @transform_1, window_bounds = array<i64: 256, 64>}, {transform_indices = @transform_2, window_bounds = array<i64: 8, 64>}]} {
    %c0 = arith.constant 0 : index
    %c0_0 = arith.constant 0 : index
    %0 = vector.load %arg1[%c0, %c0_0] : memref<8x256xf32, #tpu.memory_space<vmem>>, vector<8x256xf32>
    %c0_1 = arith.constant 0 : index
    %c0_2 = arith.constant 0 : index
    %1 = vector.load %arg2[%c0_1, %c0_2] : memref<256x64xf32, #tpu.memory_space<vmem>>, vector<256x64xf32>
    %cst = arith.constant dense<0.000000e+00> : vector<8x64xf32>
    %2 = tpu.matmul %0, %1, %cst {dimension_numbers = #tpu.dot_dimension_numbers<[1], [0], [0], [1], [0, 0, 1, 1], [], []>} : vector<8x256xf32>, vector<256x64xf32>, vector<8x64xf32> -> vector<8x64xf32>
    %c0_3 = arith.constant 0 : index
    %c0_4 = arith.constant 0 : index
    %3 = vector.load %arg3[%c0_3, %c0_4] : memref<8x64xf32, #tpu.memory_space<vmem>>, vector<8x64xf32>
    tpu.vector_store %arg3[%c0_3, %c0_4], %2 {strides = array<i32>} : memref<8x64xf32, #tpu.memory_space<vmem>>, vector<8x64xf32>,
    return
  }
  func.func @transform_0(%arg0: i32) -> (i32, i32) {
    %c0_i32 = arith.constant 0 : i32
    %c0_i32_0 = arith.constant 0 : i32
    return %arg0, %c0_i32 : i32, i32
  }
  func.func @transform_1(%arg0: i32) -> (i32, i32) {
    %c0_i32 = arith.constant 0 : i32
    %c0_i32_0 = arith.constant 0 : i32
    %c0_i32_1 = arith.constant 0 : i32
    return %c0_i32, %c0_i32_0 : i32, i32
  }
  func.func @transform_2(%arg0: i32) -> (i32, i32) {
    %c0_i32 = arith.constant 0 : i32
    %c0_i32_0 = arith.constant 0 : i32
    return %arg0, %c0_i32 : i32, i32
  }
}

</mosaic_0001>

<bundles_post_ra>
// kernel: tpu_custom_call.1
= control target key start
LH: loop header
LB: loop body
LE: loop exit
PB: predicated region body
PF: predicated region fallthrough
CT: control target
= control target key end

     0   :  { %s354_s0 = inlined_call_operand.vmem [shape: f32[8,256], index: 0, kind: input, shape index: {}]   ;;  %s355_s1 = inlined_call_operand.vmem [shape: f32[256,64], index: 1, kind: input, shape index: {}]   ;;  %s356_s2 = inlined_call_operand.hbm [shape: f32[8,64], index: 2, kind: output, shape index: {}]  }
   0x1   :  { %v30_v0 = vld [vmem:[%s355_s1 + $0x80] sm:$0xff]  ;;  %v31_v1 = vld [vmem:[%s355_s1 + $0x88] sm:$0xff]  ;;  %v32_v5 = vld [vmem:[%s355_s1 + $0x90] sm:$0xff] }
   0x2   :  { %v14_v2 = vld [vmem:[%s355_s1] sm:$0xff]  ;;  %v167_v3 = vpack.c.bf16 %v31_v1, %v30_v0  ;;  %v15_v4 = vld [vmem:[%s355_s1 + $0x8] sm:$0xff]  ;;  %v33_v6 = vld [vmem:[%s355_s1 + $0x98] sm:$0xff] }
   0x3   :  { %v169_v7 = vpack.c.bf16 %v15_v4, %v14_v2  ;;  %v171_v8 = vpack.c.bf16 %v33_v6, %v32_v5  ;;  %v16_v9 = vld [vmem:[%s355_s1 + $0x10] sm:$0xff]  ;;  %v17_v10 = vld [vmem:[%s355_s1 + $0x18] sm:$0xff]  ;;  %v34_v11 = vld [vmem:[%s355_s1 + $0xa0] sm:$0xff] }
   0x4   :  { %168 = vmatprep.subr.bf16.mxu0 %v167_v3  ;;  %v35_v12 = vld [vmem:[%s355_s1 + $0xa8] sm:$0xff]  ;;  %v173_v13 = vpack.c.bf16 %v17_v10, %v16_v9  ;;  %v18_v15 = vld [vmem:[%s355_s1 + $0x20] sm:$0xff]  ;;  %v36_v17 = vld [vmem:[%s355_s1 + $0xb0] sm:$0xff] }
   0x5   :  { %170 = vmatpush3.bf16.msra.mxu0 %v169_v7  ;;  %v175_v14 = vpack.c.bf16 %v35_v12, %v34_v11  ;;  %v19_v16 = vld [vmem:[%s355_s1 + $0x28] sm:$0xff]  ;;  %v37_v18 = vld [vmem:[%s355_s1 + $0xb8] sm:$0xff]  ;;  %v20_v21 = vld [vmem:[%s355_s1 + $0x30] sm:$0xff] }
   0x6   :  { %172 = vmatprep.subr.bf16.mxu0 %v171_v8  ;;  %v177_v19 = vpack.c.bf16 %v19_v16, %v18_v15  ;;  %v179_v20 = vpack.c.bf16 %v37_v18, %v36_v17  ;;  %v21_v22 = vld [vmem:[%s355_s1 + $0x38] sm:$0xff]  ;;  %v38_v23 = vld [vmem:[%s355_s1 + $0xc0] sm:$0xff]  ;;  %v39_v24 = vld [vmem:[%s355_s1 + $0xc8] sm:$0xff] }
   0x7   :  { %v13_v25 = vld [vmem:[%s354_s0 + $0x8] sm:$0xff] }
   0x8   :  { %110 = vmatprep.mubr.f32.mxu0 %v13_v25 }
   0x9   :  { %174 = vmatpush3.bf16.msra.mxu0 %v173_v13 }
   0xa   :  { %176 = vmatprep.subr.bf16.mxu0 %v175_v14 }
   0xb   :  { %7 = vsyncpa [#allocation3], 0  ;;  %v181_v26 = vpack.c.bf16 %v21_v22, %v20_v21  ;;  %v183_v27 = vpack.c.bf16 %v39_v24, %v38_v23  ;;  %v22_v28 = vld [vmem:[%s355_s1 + $0x40] sm:$0xff]  ;;  %v23_v29 = vld [vmem:[%s355_s1 + $0x48] sm:$0xff]  ;;  %s224_s21 = smov [#allocation2]   ;;  %vm116_vm0 = vcmask 523264  }
   0xc   :  { %v40_v30 = vld [vmem:[%s355_s1 + $0xd0] sm:$0xff]  ;;  %v41_v31 = vld [vmem:[%s355_s1 + $0xd8] sm:$0xff]  ;;  %v185_v32 = vpack.c.bf16 %v23_v29, %v22_v28  ;;  %v42_v36 = vld [vmem:[%s355_s1 + $0xe0] sm:$0xff]  ;;  %s124_s22 = sshll.u32 %s224_s21, 4  ;;  %s125_s22 = int_to_ptr.vmem [resolvable:$true] %s124_s22 }
   0xd   :  { %178 = vmatpush3.bf16.msra.mxu0 %v177_v19  ;;  %v187_v33 = vpack.c.bf16 %v41_v31, %v40_v30  ;;  %v24_v34 = vld [vmem:[%s355_s1 + $0x50] sm:$0xff]  ;;  %v25_v35 = vld [vmem:[%s355_s1 + $0x58] sm:$0xff]  ;;  %v43_v37 = vld [vmem:[%s355_s1 + $0xe8] sm:$0xff]  ;;  %s200_s23 = scalar_lea.vmem %s125_s22, 128  ;;  %p205_p1 = scmp.lt.s32.totalorder %s125_s22, %s125_s22 }
   0xe   :  { %180 = vmatprep.subr.bf16.mxu0 %v179_v20  ;;  %v189_v38 = vpack.c.bf16 %v25_v35, %v24_v34  ;;  %v191_v39 = vpack.c.bf16 %v43_v37, %v42_v36  ;;  %v26_v40 = vld [vmem:[%s355_s1 + $0x60] sm:$0xff]  ;;  %v27_v41 = vld [vmem:[%s355_s1 + $0x68] sm:$0xff]  ;;  %v44_v42 = vld [vmem:[%s355_s1 + $0xf0] sm:$0xff]  ;;  %p201_p0 = scmp.ne.s32.totalorder %s125_s22, %s200_s23  ;;  %p206_p2 = scmp.lt.s32.totalorder %s200_s23, %s200_s23 }
   0xf   :  { %v45_v43 = vld [vmem:[%s355_s1 + $0xf8] sm:$0xff]  ;;  %v193_v44 = vpack.c.bf16 %v27_v41, %v26_v40  ;;  %v28_v46 = vld [vmem:[%s355_s1 + $0x70] sm:$0xff]  ;;  %v12_v49 = vld [vmem:[%s354_s0] sm:$0xff] }
  0x10   :  { %v195_v45 = vpack.c.bf16 %v45_v43, %v44_v42  ;;  %v29_v47 = vld [vmem:[%s355_s1 + $0x78] sm:$0xff]  ;;  %p207_p3 = por %p206_p2, %p205_p1 }
  0x11   :  { %182 = vmatpush3.bf16.msra.mxu0 %v181_v26  ;;  %v197_v48 = vpack.c.bf16 %v29_v47, %v28_v46 }
  0x12   :  { %184 = vmatprep.subr.bf16.mxu0 %v183_v27  ;;  %p208_p4 = pnand %p207_p3, %p201_p0 }
  0x15   :  { %186 = vmatpush3.bf16.msra.mxu0 %v185_v32 }
  0x16   :  { %188 = vmatprep.subr.bf16.mxu0 %v187_v33 }
  0x19   :  { %190 = vmatpush3.bf16.msra.mxu0 %v189_v38 }
  0x1a   :  { %192 = vmatprep.subr.bf16.mxu0 %v191_v39 }
  0x1d   :  { %194 = vmatpush3.bf16.msra.mxu0 %v193_v44 }
  0x1e   :  { %196 = vmatprep.subr.bf16.mxu0 %v195_v45 }
  0x21   :  { %198 = vmatpush3.bf16.msra.mxu0 %v197_v48 }
  0x24   :  { %111 = vmatmul.mubr.f32.vlgmr.msra.gmra.mrb[0].mxu0 %v12_v49 }
  0xf7   :  { %v164_v50 = vpop.f32.mrb[0].mxu0 }
  0xf8   :  { %v165_v51 = vpop.f32.mrb[1].mxu0 }
  0xf9   :  { %v166_v52 = vadd.f32 %v165_v51, %v164_v50 }
  0xfb   :  { %117 = vst.msk [vmem:[#allocation2] sm:$0xff] %vm116_vm0, %v166_v52 }
  0xfc   :  { %211 = shalt.err (!%p208_p4)
}
  0xfd   :  { %s212_s0 = scalar_lea.hbm %s356_s2, 128 }
  0xfe   :  { %p213_p5 = scmp.ne.s32.totalorder %s356_s2, %s212_s0  ;;  %p216_p6 = scmp.lt.u32.totalorder %s212_s0, %s356_s2 }
 0x100   :  { %p218_p7 = pnand %p216_p6, %p213_p5 }
 0x102   :  { %221 = shalt.err (!%p218_p7)
}
 0x103   :  { %127 = dma.vmem_to_hbm [thread:$0]  %s125_s22, 128, %s356_s2, [#allocation3]  }
 0x104   :  { %222 = dma.done.wait [#allocation3], 128  }
 0x105   :  { %223 = vsyncadd [#allocation3], 4294967168 }
 0x106   :  { %131 = vsyncpa [#allocation3], 1 }

// kernel: tpu_custom_call.1
= control target key start
LH: loop header
LB: loop body
LE: loop exit
PB: predicated region body
PF: predicated region fallthrough
CT: control target
= control target key end

     0   :  { %s354_s0 = inlined_call_operand.vmem [shape: f32[8,256], index: 0, kind: input, shape index: {}]   ;;  %s355_s1 = inlined_call_operand.vmem [shape: f32[256,64], index: 1, kind: input, shape index: {}]   ;;  %s356_s2 = inlined_call_operand.hbm [shape: f32[8,64], index: 2, kind: output, shape index: {}]  }
   0x1   :  { %v30_v0 = vld [vmem:[%s355_s1 + $0x80] sm:$0xff]  ;;  %v31_v1 = vld [vmem:[%s355_s1 + $0x88] sm:$0xff]  ;;  %v32_v5 = vld [vmem:[%s355_s1 + $0x90] sm:$0xff] }
   0x2   :  { %v14_v2 = vld [vmem:[%s355_s1] sm:$0xff]  ;;  %v167_v3 = vpack.c.bf16 %v31_v1, %v30_v0  ;;  %v15_v4 = vld [vmem:[%s355_s1 + $0x8] sm:$0xff]  ;;  %v33_v6 = vld [vmem:[%s355_s1 + $0x98] sm:$0xff] }
   0x3   :  { %v169_v7 = vpack.c.bf16 %v15_v4, %v14_v2  ;;  %v171_v8 = vpack.c.bf16 %v33_v6, %v32_v5  ;;  %v16_v9 = vld [vmem:[%s355_s1 + $0x10] sm:$0xff]  ;;  %v17_v10 = vld [vmem:[%s355_s1 + $0x18] sm:$0xff]  ;;  %v34_v11 = vld [vmem:[%s355_s1 + $0xa0] sm:$0xff] }
   0x4   :  { %168 = vmatprep.subr.bf16.mxu0 %v167_v3  ;;  %v35_v12 = vld [vmem:[%s355_s1 + $0xa8] sm:$0xff]  ;;  %v173_v13 = vpack.c.bf16 %v17_v10, %v16_v9  ;;  %v18_v15 = vld [vmem:[%s355_s1 + $0x20] sm:$0xff]  ;;  %v36_v17 = vld [vmem:[%s355_s1 + $0xb0] sm:$0xff] }
   0x5   :  { %170 = vmatpush3.bf16.msra.mxu0 %v169_v7  ;;  %v175_v14 = vpack.c.bf16 %v35_v12, %v34_v11  ;;  %v19_v16 = vld [vmem:[%s355_s1 + $0x28] sm:$0xff]  ;;  %v37_v18 = vld [vmem:[%s355_s1 + $0xb8] sm:$0xff]  ;;  %v20_v21 = vld [vmem:[%s355_s1 + $0x30] sm:$0xff] }
   0x6   :  { %172 = vmatprep.subr.bf16.mxu0 %v171_v8  ;;  %v177_v19 = vpack.c.bf16 %v19_v16, %v18_v15  ;;  %v179_v20 = vpack.c.bf16 %v37_v18, %v36_v17  ;;  %v21_v22 = vld [vmem:[%s355_s1 + $0x38] sm:$0xff]  ;;  %v38_v23 = vld [vmem:[%s355_s1 + $0xc0] sm:$0xff]  ;;  %v39_v24 = vld [vmem:[%s355_s1 + $0xc8] sm:$0xff] }
   0x7   :  { %v13_v25 = vld [vmem:[%s354_s0 + $0x8] sm:$0xff] }
   0x8   :  { %110 = vmatprep.mubr.f32.mxu0 %v13_v25 }
   0x9   :  { %174 = vmatpush3.bf16.msra.mxu0 %v173_v13 }
   0xa   :  { %176 = vmatprep.subr.bf16.mxu0 %v175_v14 }
   0xb   :  { %7 = vsyncpa [#allocation3], 0  ;;  %v181_v26 = vpack.c.bf16 %v21_v22, %v20_v21  ;;  %v183_v27 = vpack.c.bf16 %v39_v24, %v38_v23  ;;  %v22_v28 = vld [vmem:[%s355_s1 + $0x40] sm:$0xff]  ;;  %v23_v29 = vld [vmem:[%s355_s1 + $0x48] sm:$0xff]  ;;  %s224_s21 = smov [#allocation2]   ;;  %vm116_vm0 = vcmask 523264  }
   0xc   :  { %v40_v30 = vld [vmem:[%s355_s1 + $0xd0] sm:$0xff]  ;;  %v41_v31 = vld [vmem:[%s355_s1 + $0xd8] sm:$0xff]  ;;  %v185_v32 = vpack.c.bf16 %v23_v29, %v22_v28  ;;  %v42_v36 = vld [vmem:[%s355_s1 + $0xe0] sm:$0xff]  ;;  %s124_s22 = sshll.u32 %s224_s21, 4  ;;  %s125_s22 = int_to_ptr.vmem [resolvable:$true] %s124_s22 }
   0xd   :  { %178 = vmatpush3.bf16.msra.mxu0 %v177_v19  ;;  %v187_v33 = vpack.c.bf16 %v41_v31, %v40_v30  ;;  %v24_v34 = vld [vmem:[%s355_s1 + $0x50] sm:$0xff]  ;;  %v25_v35 = vld [vmem:[%s355_s1 + $0x58] sm:$0xff]  ;;  %v43_v37 = vld [vmem:[%s355_s1 + $0xe8] sm:$0xff]  ;;  %s200_s23 = scalar_lea.vmem %s125_s22, 128  ;;  %p205_p1 = scmp.lt.s32.totalorder %s125_s22, %s125_s22 }
   0xe   :  { %180 = vmatprep.subr.bf16.mxu0 %v179_v20  ;;  %v189_v38 = vpack.c.bf16 %v25_v35, %v24_v34  ;;  %v191_v39 = vpack.c.bf16 %v43_v37, %v42_v36  ;;  %v26_v40 = vld [vmem:[%s355_s1 + $0x60] sm:$0xff]  ;;  %v27_v41 = vld [vmem:[%s355_s1 + $0x68] sm:$0xff]  ;;  %v44_v42 = vld [vmem:[%s355_s1 + $0xf0] sm:$0xff]  ;;  %p201_p0 = scmp.ne.s32.totalorder %s125_s22, %s200_s23  ;;  %p206_p2 = scmp.lt.s32.totalorder %s200_s23, %s200_s23 }
   0xf   :  { %v45_v43 = vld [vmem:[%s355_s1 + $0xf8] sm:$0xff]  ;;  %v193_v44 = vpack.c.bf16 %v27_v41, %v26_v40  ;;  %v28_v46 = vld [vmem:[%s355_s1 + $0x70] sm:$0xff]  ;;  %v12_v49 = vld [vmem:[%s354_s0] sm:$0xff] }
  0x10   :  { %v195_v45 = vpack.c.bf16 %v45_v43, %v44_v42  ;;  %v29_v47 = vld [vmem:[%s355_s1 + $0x78] sm:$0xff]  ;;  %p207_p3 = por %p206_p2, %p205_p1 }
  0x11   :  { %182 = vmatpush3.bf16.msra.mxu0 %v181_v26  ;;  %v197_v48 = vpack.c.bf16 %v29_v47, %v28_v46 }
  0x12   :  { %184 = vmatprep.subr.bf16.mxu0 %v183_v27  ;;  %p208_p4 = pnand %p207_p3, %p201_p0 }
  0x15   :  { %186 = vmatpush3.bf16.msra.mxu0 %v185_v32 }
  0x16   :  { %188 = vmatprep.subr.bf16.mxu0 %v187_v33 }
  0x19   :  { %190 = vmatpush3.bf16.msra.mxu0 %v189_v38 }
  0x1a   :  { %192 = vmatprep.subr.bf16.mxu0 %v191_v39 }
  0x1d   :  { %194 = vmatpush3.bf16.msra.mxu0 %v193_v44 }
  0x1e   :  { %196 = vmatprep.subr.bf16.mxu0 %v195_v45 }
  0x21   :  { %198 = vmatpush3.bf16.msra.mxu0 %v197_v48 }
  0x24   :  { %111 = vmatmul.mubr.f32.vlgmr.msra.gmra.mrb[0].mxu0 %v12_v49 }
  0xf7   :  { %v164_v50 = vpop.f32.mrb[0].mxu0 }
  0xf8   :  { %v165_v51 = vpop.f32.mrb[1].mxu0 }
  0xf9   :  { %v166_v52 = vadd.f32 %v165_v51, %v164_v50 }
  0xfb   :  { %117 = vst.msk [vmem:[#allocation2] sm:$0xff] %vm116_vm0, %v166_v52 }
  0xfc   :  { %211 = shalt.err (!%p208_p4)
}
  0xfd   :  { %s212_s0 = scalar_lea.hbm %s356_s2, 128 }
  0xfe   :  { %p213_p5 = scmp.ne.s32.totalorder %s356_s2, %s212_s0  ;;  %p216_p6 = scmp.lt.u32.totalorder %s212_s0, %s356_s2 }
 0x100   :  { %p218_p7 = pnand %p216_p6, %p213_p5 }
 0x102   :  { %221 = shalt.err (!%p218_p7)
}
 0x103   :  { %127 = dma.vmem_to_hbm [thread:$0]  %s125_s22, 128, %s356_s2, [#allocation3]  }
 0x104   :  { %222 = dma.done.wait [#allocation3], 128  }
 0x105   :  { %223 = vsyncadd [#allocation3], 4294967168 }
 0x106   :  { %131 = vsyncpa [#allocation3], 1 }

</bundles_post_ra>
